<compile_context>
chip_gen: v7x
topology: tpu7x:2x2x1
jax: 0.10.0
libtpu: 0.0.40
codegen_flags: <defaults>
</compile_context>

<pallas_src>
import functools
import re

import jax
import jax.numpy as jnp
from jax.experimental import pallas as pl
from jax.experimental.pallas import tpu as pltpu


# ----------------------------------------------------------------------------
# Kernel body: 2-D (rows, lanes) elementwise RoPE rotation.
# ----------------------------------------------------------------------------
def _rope_kernel(x_ref, cos_ref, sin_ref, o_ref):
    x = x_ref[...]                                   # (tR, C)
    c = x.shape[-1]

    # rotated[even lane i] = -x[i+1], rotated[odd lane i] = x[i-1]
    # Two circular lane rolls on the XLU + one select; the wrap-around lanes
    # are never selected because C is even.  The negation of even lanes is
    # folded here instead of pre-scaling the sin table in the wrapper.
    # (iota/cmp/select are free filler under the HBM roofline on v5e/v6e.)
    nxt = pltpu.roll(x, shift=c - 1, axis=1)         # out[i] = x[i+1]
    prv = pltpu.roll(x, shift=1, axis=1)             # out[i] = x[i-1]
    lane = jax.lax.broadcasted_iota(jnp.int32, x.shape, dimension=1)
    rotated = jnp.where((lane & 1) == 0, -nxt, prv)

    out = x * cos_ref[...] + rotated * sin_ref[...]
    o_ref[...] = out.astype(o_ref.dtype)


# ----------------------------------------------------------------------------
# Table construction (mirrors the PyTorch __init__, but vectorized).
# Tables are built once (cache them on the caller side); no per-call rescale.
# ----------------------------------------------------------------------------
def make_rope_tables(d_model, max_len, dtype=jnp.float32):
    # theta(i) = 10000 ** (-2*i / d_model) with the raw feature index i
    # (nonstandard RoPE, but matches the reference module exactly).
    i = jnp.arange(d_model, dtype=jnp.float32)
    theta = jnp.power(10000.0, -2.0 * i / float(d_model))
    m = jnp.arange(max_len, dtype=jnp.float32)
    angle = m[:, None] * theta[None, :]
    return jnp.cos(angle).astype(dtype), jnp.sin(angle).astype(dtype)


# ----------------------------------------------------------------------------
# Layout / tiling helpers.
# ----------------------------------------------------------------------------
def _plan_layout(S, D):
    """Choose a lane-dense (R, C) view of the (S, D) plane.

    Returns (R, C, D_work): the kernel operates on width D_work >= D; C is
    always a multiple of 128 so every store is a full-width unmasked vst.
    """
    if D % 128 == 0:
        return S, D, D
    total = S * D
    if total % 128 == 0:
        # Pack several sequence positions per row; pairs stay intact (C even).
        c = 128
        while total % (c * 2) == 0 and c * 2 <= 2048:
            c *= 2
        return total // c, c, D
    # Pad D up to the next multiple of 128 (padded lanes produce zeros and
    # are sliced off afterwards) -> no masked partial stores.
    d_pad = ((D + 127) // 128) * 128
    return S, d_pad, d_pad


@functools.lru_cache(maxsize=1)
def _chip_generation():
    """Best-effort TPU generation (5/6/7/...) by chip version, else None."""
    try:
        info = pltpu.get_tpu_info()
        ver = getattr(info, "chip_version", None)
        if ver is not None:
            m = re.search(r"(\d+)", str(getattr(ver, "name", ver)))
            if m:
                return int(m.group(1))
    except Exception:
        pass
    try:
        m = re.search(r"v(\d+)", jax.devices()[0].device_kind.lower())
        if m:
            return int(m.group(1))
    except Exception:
        pass
    return None


def _vmem_budget(gen):
    """Per-buffer byte target for x/out tiles and optional scoped-VMEM limit."""
    if gen is None:
        # Unknown chip: stay well under the smallest scoped default (16 MiB).
        return 1 << 20, None
    if gen >= 7:
        # v7x: 64 MiB physical per TC, 32 MiB scoped default. Keep headroom.
        return 3 << 20, 48 << 20
    if gen >= 6:
        # v6e: 128 MiB physical, 32 MiB scoped default.
        return 4 << 20, 64 << 20
    # v5e: 128 MiB physical but only ~820 GB/s HBM -> bigger tiles buy nothing;
    # 2 MiB tiles already sit at the measured roofline plateau.
    return 2 << 20, 32 << 20


def _choose_row_tile(R, C, itemsize, per_buf_bytes, min_row_blocks=1):
    """Largest legal row tile under the per-buffer budget (>= min_row_blocks)."""
    target = max(1, per_buf_bytes // (C * itemsize))
    if min_row_blocks > 1:
        target = min(target, pl.cdiv(R, min_row_blocks))
    if target >= R and min_row_blocks <= 1:
        return R                       # full dim (always a legal block dim)
    t = (target // 32) * 32            # multiple of 8/16/32 sublanes
    if t == 0:
        return R
    return min(t, R)


# ----------------------------------------------------------------------------
# Wrapper.
# ----------------------------------------------------------------------------
def rope_forward(x, cos_pos, sin_pos, *, table_dtype=None):
    B, S, D = x.shape
    assert cos_pos.shape == (S, D) and sin_pos.shape == (S, D)
    assert D % 2 == 0, "d_model must be even (the reference pairs features)"
    dtype = x.dtype
    itemsize = jnp.dtype(dtype).itemsize

    # Optional table precision override (e.g. bf16 tables for f32 x halves
    # table HBM traffic; upcast happens in-kernel).  No per-call sign-fold or
    # rescale: the even-lane negation lives inside the kernel.
    if table_dtype is not None and cos_pos.dtype != jnp.dtype(table_dtype):
        cos_pos = cos_pos.astype(table_dtype)
        sin_pos = sin_pos.astype(table_dtype)

    # Lane-dense packing (or lane padding) of the (S, D) plane.
    R, C, D_work = _plan_layout(S, D)
    if D_work != D:
        pad = D_work - D
        x_in = jnp.pad(x, ((0, 0), (0, 0), (0, pad)))
        cos_in = jnp.pad(cos_pos, ((0, 0), (0, pad)))
        sin_in = jnp.pad(sin_pos, ((0, 0), (0, pad)))
    else:
        x_in, cos_in, sin_in = x, cos_pos, sin_pos
    x2 = x_in.reshape(B, R, C)
    cos2 = cos_in.reshape(R, C)
    sin2 = sin_in.reshape(R, C)

    gen = _chip_generation()
    per_buf, vmem_limit = _vmem_budget(gen)

    # With B == 1, force >= 2 blocks along the parallel row axis so both v7x
    # TensorCores get work (one extra grid step is noise on 1-TC chips).
    min_row_blocks = 2 if (B == 1 and R >= 64) else 1
    tR = _choose_row_tile(R, C, itemsize, per_buf, min_row_blocks)
    n_r = pl.cdiv(R, tR)

    cp_kwargs = dict(dimension_semantics=("parallel", "parallel"))
    if vmem_limit is not None:
        cp_kwargs["vmem_limit_bytes"] = vmem_limit

    cost = pl.CostEstimate(
        flops=4 * B * R * C,
        transcendentals=0,
        bytes_accessed=(2 * B * R * C + 2 * R * C) * itemsize,
    )

    def build(table_pipeline_mode):
        tbl_kwargs = {}
        if table_pipeline_mode is not None:
            tbl_kwargs["pipeline_mode"] = table_pipeline_mode
        return pl.pallas_call(
            _rope_kernel,
            out_shape=jax.ShapeDtypeStruct((B, R, C), dtype),
            grid_spec=pltpu.PrefetchScalarGridSpec(
                num_scalar_prefetch=0,
                # B innermost: the table block index is constant across the
                # fast axis, so cos/sin are not re-DMA'd per batch element.
                grid=(n_r, B),
                in_specs=[
                    pl.BlockSpec((pl.Squeezed(), tR, C), lambda r, b: (b, r, 0)),
                    pl.BlockSpec((tR, C), lambda r, b: (r, 0), **tbl_kwargs),
                    pl.BlockSpec((tR, C), lambda r, b: (r, 0), **tbl_kwargs),
                ],
                out_specs=pl.BlockSpec((pl.Squeezed(), tR, C),
                                       lambda r, b: (b, r, 0)),
            ),
            compiler_params=pltpu.CompilerParams(**cp_kwargs),
            cost_estimate=cost,
        )

    # Tables only change when the row tile changes (never across the inner B
    # axis), so single-buffer them and spend the freed VMEM on larger x/out
    # tiles.  Fall back to default double-buffering if unsupported.
    try:
        table_mode = pl.Buffered(1) if hasattr(pl, "Buffered") else None
    except Exception:
        table_mode = None
    try:
        out = build(table_mode)(x2, cos2, sin2)
    except Exception:
        if table_mode is None:
            raise
        out = build(None)(x2, cos2, sin2)

    out = out.reshape(B, S, D_work)
    if D_work != D:
        out = out[..., :D]
    return out


# ----------------------------------------------------------------------------
# Pure-JAX mirror of the PyTorch forward, for verification.
# ----------------------------------------------------------------------------
def rope_reference(x, cos_pos, sin_pos):
    new_x = jnp.zeros_like(x)
    new_x = new_x.at[..., 1::2].set(x[..., :-1:2])
    new_x = new_x.at[..., 0::2].set(-x[..., 1::2])
    return x * cos_pos[None] + new_x * sin_pos[None]


if __name__ == "__main__":
    B, max_len, d_model = 2, 8, 32  # input seq_len == max_len, as in the module

    cos_pos, sin_pos = make_rope_tables(d_model, max_len, dtype=jnp.float32)

    key = jax.random.PRNGKey(0)
    x = jax.random.normal(key, (B, max_len, d_model), dtype=jnp.float32)

    out = jax.block_until_ready(rope_forward(x, cos_pos, sin_pos))

    ref = rope_reference(x, cos_pos, sin_pos)
    assert out.shape == x.shape and out.dtype == x.dtype
    assert jnp.allclose(out, ref, atol=1e-5, rtol=1e-5), "mismatch vs reference"

    print("KERNEL_OK")
</pallas_src>

<mosaic_0001>
module attributes {stable_mosaic.version = 11 : i64} {
  func.func @_rope_kernel(%arg0: i32, %arg1: i32, %arg2: memref<1x1x256xf32, #tpu.memory_space<vmem>>, %arg3: memref<1x256xf32, #tpu.memory_space<vmem>>, %arg4: memref<1x256xf32, #tpu.memory_space<vmem>>, %arg5: memref<1x1x256xf32, #tpu.memory_space<vmem>>) attributes {dimension_semantics = [#tpu.dimension_semantics<parallel>, #tpu.dimension_semantics<parallel>], iteration_bounds = array<i64: 1, 2>, scalar_prefetch = 0 : i64, scratch_operands = 0 : i64, tpu.core_type = #tpu.core_type<tc>, window_params = [{transform_indices = @transform_0, window_bounds = array<i64: 1, 1, 256>}, {pipeline_mode = #tpu.pipeline_mode<synchronous>, transform_indices = @transform_1, window_bounds = array<i64: 1, 256>}, {pipeline_mode = #tpu.pipeline_mode<synchronous>, transform_indices = @transform_2, window_bounds = array<i64: 1, 256>}, {transform_indices = @transform_3, window_bounds = array<i64: 1, 1, 256>}]} {
    %c0 = arith.constant 0 : index
    %c0_0 = arith.constant 0 : index
    %c0_1 = arith.constant 0 : index
    %0 = vector.load %arg2[%c0, %c0_0, %c0_1] : memref<1x1x256xf32, #tpu.memory_space<vmem>>, vector<1x1x256xf32>
    %1 = vector.shape_cast %0 : vector<1x1x256xf32> to vector<1x256xf32>
    %c255_i32 = arith.constant 255 : i32
    %2 = tpu.dynamic_rotate %1 by %c255_i32 dim 1 : vector<1x256xf32>, i32 -> vector<1x256xf32>
    %c1_i32 = arith.constant 1 : i32
    %3 = tpu.dynamic_rotate %1 by %c1_i32 dim 1 : vector<1x256xf32>, i32 -> vector<1x256xf32>
    %4 = tpu.iota {dimensions = array<i32: 1>} : vector<1x256xi32>
    %c1_i32_2 = arith.constant 1 : i32
    %5 = vector.broadcast %c1_i32_2 : i32 to vector<1x256xi32>
    %6 = arith.andi %4, %5 : vector<1x256xi32>
    %c0_i32 = arith.constant 0 : i32
    %7 = vector.broadcast %c0_i32 : i32 to vector<1x256xi32>
    %8 = arith.cmpi eq, %6, %7 : vector<1x256xi32>
    %cst = arith.constant 0.000000e+00 : f32
    %9 = vector.broadcast %cst : f32 to vector<1x256xf32>
    %10 = arith.subf %9, %2 : vector<1x256xf32>
    %11 = arith.select %8, %10, %3 : vector<1x256xi1>, vector<1x256xf32>
    %c0_3 = arith.constant 0 : index
    %c0_4 = arith.constant 0 : index
    %12 = vector.load %arg3[%c0_3, %c0_4] : memref<1x256xf32, #tpu.memory_space<vmem>>, vector<1x256xf32>
    %13 = arith.mulf %1, %12 : vector<1x256xf32>
    %c0_5 = arith.constant 0 : index
    %c0_6 = arith.constant 0 : index
    %14 = vector.load %arg4[%c0_5, %c0_6] : memref<1x256xf32, #tpu.memory_space<vmem>>, vector<1x256xf32>
    %15 = arith.mulf %11, %14 : vector<1x256xf32>
    %16 = arith.addf %13, %15 : vector<1x256xf32>
    %c0_7 = arith.constant 0 : index
    %c0_8 = arith.constant 0 : index
    %c0_9 = arith.constant 0 : index
    %17 = vector.load %arg5[%c0_7, %c0_8, %c0_9] : memref<1x1x256xf32, #tpu.memory_space<vmem>>, vector<1x1x256xf32>
    %18 = vector.shape_cast %17 : vector<1x1x256xf32> to vector<1x256xf32>
    %19 = vector.shape_cast %16 : vector<1x256xf32> to vector<1x1x256xf32>
    tpu.vector_store %arg5[%c0_7, %c0_8, %c0_9], %19 {strides = array<i32>} : memref<1x1x256xf32, #tpu.memory_space<vmem>>, vector<1x1x256xf32>,
    return
  }
  func.func @transform_0(%arg0: i32, %arg1: i32) -> (i32, i32, i32) {
    %c0_i32 = arith.constant 0 : i32
    %c0_i32_0 = arith.constant 0 : i32
    return %arg1, %arg0, %c0_i32 : i32, i32, i32
  }
  func.func @transform_1(%arg0: i32, %arg1: i32) -> (i32, i32) {
    %c0_i32 = arith.constant 0 : i32
    %c0_i32_0 = arith.constant 0 : i32
    return %arg0, %c0_i32 : i32, i32
  }
  func.func @transform_2(%arg0: i32, %arg1: i32) -> (i32, i32) {
    %c0_i32 = arith.constant 0 : i32
    %c0_i32_0 = arith.constant 0 : i32
    return %arg0, %c0_i32 : i32, i32
  }
  func.func @transform_3(%arg0: i32, %arg1: i32) -> (i32, i32, i32) {
    %c0_i32 = arith.constant 0 : i32
    %c0_i32_0 = arith.constant 0 : i32
    return %arg1, %arg0, %c0_i32 : i32, i32, i32
  }
}

module attributes {stable_mosaic.version = 11 : i64} {
  func.func @_rope_kernel(%arg0: i32, %arg1: i32, %arg2: memref<1x1x256xf32, #tpu.memory_space<vmem>>, %arg3: memref<1x256xf32, #tpu.memory_space<vmem>>, %arg4: memref<1x256xf32, #tpu.memory_space<vmem>>, %arg5: memref<1x1x256xf32, #tpu.memory_space<vmem>>) attributes {dimension_semantics = [#tpu.dimension_semantics<parallel>, #tpu.dimension_semantics<parallel>], iteration_bounds = array<i64: 1, 2>, scalar_prefetch = 0 : i64, scratch_operands = 0 : i64, tpu.core_type = #tpu.core_type<tc>, window_params = [{transform_indices = @transform_0, window_bounds = array<i64: 1, 1, 256>}, {transform_indices = @transform_1, window_bounds = array<i64: 1, 256>}, {transform_indices = @transform_2, window_bounds = array<i64: 1, 256>}, {transform_indices = @transform_3, window_bounds = array<i64: 1, 1, 256>}]} {
    %c0 = arith.constant 0 : index
    %c0_0 = arith.constant 0 : index
    %c0_1 = arith.constant 0 : index
    %0 = vector.load %arg2[%c0, %c0_0, %c0_1] : memref<1x1x256xf32, #tpu.memory_space<vmem>>, vector<1x1x256xf32>
    %1 = vector.shape_cast %0 : vector<1x1x256xf32> to vector<1x256xf32>
    %c255_i32 = arith.constant 255 : i32
    %2 = tpu.dynamic_rotate %1 by %c255_i32 dim 1 : vector<1x256xf32>, i32 -> vector<1x256xf32>
    %c1_i32 = arith.constant 1 : i32
    %3 = tpu.dynamic_rotate %1 by %c1_i32 dim 1 : vector<1x256xf32>, i32 -> vector<1x256xf32>
    %4 = tpu.iota {dimensions = array<i32: 1>} : vector<1x256xi32>
    %c1_i32_2 = arith.constant 1 : i32
    %5 = vector.broadcast %c1_i32_2 : i32 to vector<1x256xi32>
    %6 = arith.andi %4, %5 : vector<1x256xi32>
    %c0_i32 = arith.constant 0 : i32
    %7 = vector.broadcast %c0_i32 : i32 to vector<1x256xi32>
    %8 = arith.cmpi eq, %6, %7 : vector<1x256xi32>
    %cst = arith.constant 0.000000e+00 : f32
    %9 = vector.broadcast %cst : f32 to vector<1x256xf32>
    %10 = arith.subf %9, %2 : vector<1x256xf32>
    %11 = arith.select %8, %10, %3 : vector<1x256xi1>, vector<1x256xf32>
    %c0_3 = arith.constant 0 : index
    %c0_4 = arith.constant 0 : index
    %12 = vector.load %arg3[%c0_3, %c0_4] : memref<1x256xf32, #tpu.memory_space<vmem>>, vector<1x256xf32>
    %13 = arith.mulf %1, %12 : vector<1x256xf32>
    %c0_5 = arith.constant 0 : index
    %c0_6 = arith.constant 0 : index
    %14 = vector.load %arg4[%c0_5, %c0_6] : memref<1x256xf32, #tpu.memory_space<vmem>>, vector<1x256xf32>
    %15 = arith.mulf %11, %14 : vector<1x256xf32>
    %16 = arith.addf %13, %15 : vector<1x256xf32>
    %c0_7 = arith.constant 0 : index
    %c0_8 = arith.constant 0 : index
    %c0_9 = arith.constant 0 : index
    %17 = vector.load %arg5[%c0_7, %c0_8, %c0_9] : memref<1x1x256xf32, #tpu.memory_space<vmem>>, vector<1x1x256xf32>
    %18 = vector.shape_cast %17 : vector<1x1x256xf32> to vector<1x256xf32>
    %19 = vector.shape_cast %16 : vector<1x256xf32> to vector<1x1x256xf32>
    tpu.vector_store %arg5[%c0_7, %c0_8, %c0_9], %19 {strides = array<i32>} : memref<1x1x256xf32, #tpu.memory_space<vmem>>, vector<1x1x256xf32>,
    return
  }
  func.func @transform_0(%arg0: i32, %arg1: i32) -> (i32, i32, i32) {
    %c0_i32 = arith.constant 0 : i32
    %c0_i32_0 = arith.constant 0 : i32
    return %arg1, %arg0, %c0_i32 : i32, i32, i32
  }
  func.func @transform_1(%arg0: i32, %arg1: i32) -> (i32, i32) {
    %c0_i32 = arith.constant 0 : i32
    %c0_i32_0 = arith.constant 0 : i32
    return %arg0, %c0_i32 : i32, i32
  }
  func.func @transform_2(%arg0: i32, %arg1: i32) -> (i32, i32) {
    %c0_i32 = arith.constant 0 : i32
    %c0_i32_0 = arith.constant 0 : i32
    return %arg0, %c0_i32 : i32, i32
  }
  func.func @transform_3(%arg0: i32, %arg1: i32) -> (i32, i32, i32) {
    %c0_i32 = arith.constant 0 : i32
    %c0_i32_0 = arith.constant 0 : i32
    return %arg1, %arg0, %c0_i32 : i32, i32, i32
  }
}

</mosaic_0001>

<bundles_post_ra>
// kernel: tpu_custom_call.1
= control target key start
LH: loop header
LB: loop body
LE: loop exit
PB: predicated region body
PF: predicated region fallthrough
CT: control target
= control target key end

     0   :  { %8 = vsyncpa [#allocation3], 0  ;;  %s852_s0 = inlined_call_operand.hbm [shape: f32[2,1,256], index: 0, kind: input, shape index: {}]   ;;  %s853_s1 = inlined_call_operand.vmem [shape: f32[1,256], index: 1, kind: input, shape index: {}]   ;;  %s854_s2 = inlined_call_operand.vmem [shape: f32[1,256], index: 2, kind: input, shape index: {}]   ;;  %s855_s3 = inlined_call_operand.hbm [shape: f32[2,1,256], index: 3, kind: output, shape index: {}]  }
   0x1   :  { %10 = vsyncpa [#allocation3 + $0x1], 0 }
   0x2   :  { %11 = vsyncpa [#allocation4], 0 }
   0x3   :  { %13 = vsyncpa [#allocation4 + $0x1], 0  ;;  %s670_s12 = smov 0   ;;  %s672_s13 = smov 0  }
   0x4   :  { %s674_s14 = smov 0   ;;  %s676_s15 = smov 0  }
   0x5   :  { %s678_s16 = smov 0   ;;  %s680_s17 = smov 0  }
   0x6 LB: > { %s447_s18 = sadd.s32 4294967295, %s643_s17   ;;  %s448_s19 = sadd.s32 4294967294, %s643_s17   ;;  %s643_s17 = sphi %s680_s17, %s19_s17   ;;  %s639_s16 = sphi %s678_s16, %s871_s16   ;;  %s635_s15 = sphi %s676_s15, %s870_s15   ;;  %s631_s14 = sphi %s674_s14, %s869_s14   ;;  %s627_s13 = sphi %s672_s13, %s868_s13   ;;  %s623_s12 = sphi %s670_s12, %s867_s12  }
   0x7   : > { %s28_s20 = sadd.s32 1, %s639_s16  ;;  %s40_s21 = sadd.s32 1, %s631_s14 }
   0x8   : > { %p29_p0 = scmp.ge.s32.totalorder %s28_s20, 2  ;;  %p47_p1 = scmp.ne.s32.totalorder %s631_s14, %s627_s13 }
   0x9   : > { %p48_p2 = scmp.eq.s32.totalorder %s643_s17, 0  ;;  %p53_p3 = scmp.ne.s32.totalorder %s627_s13, %s623_s12 }
   0xa   : > { %s873_s20 = smov (%p29_p0, %s28_s20), 0  ;;  %p54_p5 = scmp.eq.s32.totalorder %s447_s18, 0 }
   0xb   : > { %p711_p4 = por %p48_p2, %p47_p1  ;;  %s35_s23 = ssub.s32 %s639_s16, %s873_s20 }
   0xc   : > { %p131_p6 = scmp.eq.s32.totalorder %s447_s18, 1  ;;  %p38_p7 = scmp.eq.s32.totalorder %s35_s23, 0 }
   0xd   : > { %p717_p8 = por %p54_p5, %p53_p3  ;;  %p137_p10 = scmp.eq.s32.totalorder %s448_s19, 1 }
   0xe   : > { %p721_p9 = por %p131_p6, %p47_p1  ;;  %p478_p13 = scmp.lt.s32.totalorder %s643_s17, 2 }
   0xf   : > { %s726_s26 = scalar_select %p38_p7, %s631_s14, %s40_s21  }
  0x10   : > { %s859_s25 = scalar_select %p721_p9, 1, 0 }
  0x11   : > { %p728_p11 = por %p137_p10, %p53_p3  ;;  %s171_s28 = sand.u32 1, %s631_s14  }
  0x12   : > { %s453_s29 = sshll.u32 %s171_s28, 1  ;;  %s464_s30 = sshll.u32 %s639_s16, 5 }
  0x13   : > { %s860_s27 = scalar_select %p728_p11, 1, 0 }
  0x14   : > { %s739_s6 = scalar_lea.hbm %s852_s0, %s464_s30  ;;  %s175_s7 = scalar_lea.vmem [#allocation2], %s453_s29 }
  0x15   : > { %s185_s8 = sshll.u32 %s175_s7, 4  ;;  %p745_p0 = pnand %p478_p13, %p711_p4  ;;  %s741_s8 = int_to_ptr.vmem [resolvable:$true] %s185_s8 }
  0x16   : > { %s172_s10 = scalar_lea.sflag [#allocation3], %s171_s28  ;;  %s531_s11 = scalar_lea.hbm %s739_s6, 32 }
  0x17   : > { %p532_p3 = scmp.ne.s32.totalorder %s739_s6, %s531_s11  ;;  %p533_p5 = pneg %p745_p0 }
  0x18   : > { %s536_s21 = scalar_lea.hbm %s852_s0, 64  ;;  %p537_p4 = scmp.lt.u32.totalorder %s739_s6, %s852_s0 }
  0x19   : > { %p534_p6 = pnand %p533_p5, %p532_p3  ;;  %p538_p10 = scmp.lt.u32.totalorder %s536_s21, %s531_s11 }
  0x1a   : > { %p540_p12 = scmp.lt.u32.totalorder %s531_s11, %s739_s6 }
  0x1b   : > { %p535_p7 = pneg %p534_p6  ;;  %p539_p13 = por %p538_p10, %p537_p4 }
  0x1d   : > { %p541_p1 = por %p540_p12, %p539_p13 }
  0x1f   : > { %p542_p2 = pnand %p541_p1, %p535_p7 }
  0x21   : > { %545 = shalt.err (!%p542_p2)
}
  0x22   : > { %s546_s28 = scalar_lea.vmem %s741_s8, 32  ;;  %s645_s29 = smov [#allocation2]  }
  0x23   : > { %p547_p3 = scmp.ne.s32.totalorder %s741_s8, %s546_s28  ;;  %s551_s30 = sshll.u32 %s645_s29, 4  ;;  %s552_s30 = int_to_ptr.vmem [resolvable:$false] %s551_s30 }
  0x24   : > { %s553_s4 = scalar_lea.vmem %s552_s30, 64  ;;  %p554_p9 = scmp.lt.s32.totalorder %s741_s8, %s552_s30 }
  0x25   : > { %p549_p6 = pnand %p547_p3, %p533_p5  ;;  %p555_p4 = scmp.lt.s32.totalorder %s553_s4, %s546_s28 }
  0x27   : > { %p550_p11 = pneg %p549_p6  ;;  %p556_p10 = por %p555_p4, %p554_p9 }
  0x29   : > { %p557_p12 = pnand %p556_p10, %p550_p11 }
  0x2b   : > { %560 = shalt.err (!%p557_p12)
}
  0x2c   : > { %473 = dma.hbm_to_vmem [thread:$0]  (!%p745_p0), %s739_s6, 32, %s741_s8, %s172_s10  }
  0x2d   : > { %p862_p1 = scmp.lt.s32.totalorder %s643_s17, 3  ;;  %p863_p2 = scmp.ge.s32.totalorder %s643_s17, 1 }
  0x2f   : > { %p191_p5 = pnand %p863_p2, %p862_p1 }
  0x30   : > { %s781_s5 = sand.u32 (!%p191_p5), 1, %s627_s13  }
  0x31   : > { %194 = sbr.rel (%p191_p5) target bundleno = 212 (0xd4), region = 32  ;;  %s457_s7 = sshll.u32 (!%p191_p5), %s781_s5, 1 }
  0x32   : > { %s197_s11 = scalar_lea.sflag (!%p191_p5), [#allocation3], %s781_s5  ;;  %s200_s9 = scalar_lea.vmem (!%p191_p5), [#allocation2], %s457_s7 }
  0x38   : > { %614 = dma.done.wait (%p717_p8), %s197_s11, 32  }
  0x39   : > { %616 = vsyncadd (%p717_p8), %s197_s11, 4294967264  ;;  %v241_v0 = vlaneseq  ;;  %v239_v4 = vld [vmem:[%s200_s9] sm:$0x3]  ;;  %s646_s6 = smov 1   ;;  %s647_s8 = smov 127  }
  0x3a   : > { %v648_v9 = vmov 1966171168   ;;  %v278_v13 = vld [vmem:[%s854_s2] sm:$0x3]  ;;  %s465_s21 = sshll.u32 %s635_s15, 5  ;;  %s230_s22 = scalar_lea.vmem [#allocation5], %s457_s7 }
  0x3b   : > { %v242_v1 = vshrl.u32 %v241_v0, 7  ;;  %v256_v7 = vand.u32 127, %v241_v0  ;;  %v296_v10 = vunpack.c.l.s4 %v648_v9  ;;  %v276_v32 = vld [vmem:[%s853_s1] sm:$0x3]  ;;  %s333_s23 = sshll.u32 %s230_s22, 4  ;;  %vm313_vm4 = vcmp.lt.s32.totalorder %v241_v0, 256  ;;  %s803_s30 = scalar_lea.hbm %s855_s3, %s465_s21  ;;  %s805_s23 = int_to_ptr.vmem [resolvable:$true] %s333_s23 }
  0x3c   : > { %v277_v34 = vmul.f32 %v276_v32, %v239_v4  ;;  %s317_s4 = scalar_lea.sflag [#allocation4], %s781_s5  ;;  %s561_s11 = scalar_lea.vmem %s805_s23, 32 }
  0x3d   : > { %v243_v2 = vsub.s32 0, %v242_v1  ;;  %v247_v3 = vsub.s32 1, %v242_v1  ;;  %v267_v8 = vadd.s32 128, %v256_v7  ;;  %v268_v14 = vand.u32 1, %v256_v7  ;;  %p562_p8 = scmp.ne.s32.totalorder %s805_s23, %s561_s11  ;;  %p864_p9 = scmp.ne.s32.totalorder %s859_s25, 0 }
  0x3e   : > { %vm257_vm0 = vcmp.lt.s32.totalorder %v256_v7, 127  ;;  %v297_v17 = vunpack.c.0.s8 %v296_v10  ;;  %vm264_vm1 = vcmp.lt.s32.totalorder %v256_v7, 1  ;;  %s649_s15 = smov [#allocation5]  }
  0x3f   : > { %v244_v5 = vrot.slane %v239_v4, %v243_v2  ;;  %v248_v6 = vrot.slane %v239_v4, %v247_v3  ;;  %v269_v15 = vand.u32 1, %v267_v8  ;;  %v283_v16 = vrot.slane %v278_v13, %v243_v2  ;;  %p563_p11 = pnand %p562_p8, %p864_p9  ;;  %s565_s7 = sshll.u32 %s649_s15, 4  ;;  %s566_s7 = int_to_ptr.vmem [resolvable:$false] %s565_s7 }
  0x40   : > { %v287_v18 = vrot.slane %v278_v13, %v247_v3  ;;  %vm270_vm2 = vcmp.eq.s32.totalorder %v268_v14, 0  ;;  %v300_v29 = vsub.s32 %v297_v17, %v242_v1  ;;  %s567_s9 = scalar_lea.vmem %s566_s7, 64  ;;  %p568_p7 = scmp.lt.s32.totalorder %s805_s23, %s566_s7 }
  0x41   : > { %260 = vrot.lane.b32.xlu1 %v244_v5, %s646_s6  ;;  %251 = vrot.lane.b32.xlu0 %v244_v5, %s647_s8  ;;  %vm271_vm3 = vcmp.eq.s32.totalorder %v269_v15, 0  ;;  %p564_p0 = pneg %p563_p11  ;;  %p569_p13 = scmp.lt.s32.totalorder %s567_s9, %s561_s11 }
  0x43   : > { %p570_p3 = por %p569_p13, %p568_p7 }
  0x45   : > { %262 = vrot.lane.b32.xlu1 %v248_v6, %s646_s6  ;;  %253 = vrot.lane.b32.xlu0 %v248_v6, %s647_s8  ;;  %p571_p6 = pnand %p570_p3, %p564_p0 }
  0xb3   : > { %v261_v11 = vpop.permute.xlu1 %260  ;;  %v252_v12 = vpop.permute.xlu0 %251 }
  0xb7   : > { %v263_v19 = vpop.permute.xlu1 %262  ;;  %v254_v20 = vpop.permute.xlu0 %253 }
  0xb8   : > { %v258_v21 = vsel %vm257_vm0, %v252_v12, %v254_v20  ;;  %v259_v22 = vsel %vm257_vm0, %v254_v20, %v252_v12  ;;  %v265_v25 = vsel %vm264_vm1, %v261_v11, %v263_v19  ;;  %v266_v26 = vsel %vm264_vm1, %v263_v19, %v261_v11 }
  0xb9   : > { %v272_v23 = vsub.f32 0.0, %v258_v21  ;;  %v273_v24 = vsub.f32 0.0, %v259_v22 }
  0xbb   : > { %v274_v27 = vsel %vm270_vm2, %v272_v23, %v266_v26  ;;  %v275_v28 = vsel %vm271_vm3, %v273_v24, %v265_v25 }
  0xbc   : > { %v290_v30 = vmul.f32 %v283_v16, %v274_v27  ;;  %v291_v31 = vmul.f32 %v287_v18, %v275_v28 }
  0xbe   : > { %v294_v33 = vcombine.low %v290_v30, %v291_v31 }
  0xc0   : > { %v301_v35 = vrot.slane %v294_v33, %v300_v29 }
  0xc2   : > { %v308_v36 = vrot.slane %v301_v35, %v300_v29 }
  0xc4   : > { %v310_v37 = vadd.f32 %v308_v36, %v277_v34 }
  0xc6   : > { %315 = vst.msk [vmem:[%s230_s22] sm:$0x3] %vm313_vm4, %v310_v37 }
  0xc7   : > { %574 = shalt.err (!%p571_p6)
}
  0xc8   : > { %s575_s5 = scalar_lea.hbm %s803_s30, 32  ;;  %s579_s24 = scalar_lea.hbm %s855_s3, 64 }
  0xc9   : > { %p576_p4 = scmp.ne.s32.totalorder %s803_s30, %s575_s5  ;;  %p580_p1 = scmp.lt.u32.totalorder %s803_s30, %s855_s3 }
  0xca   : > { %p581_p2 = scmp.lt.u32.totalorder %s579_s24, %s575_s5  ;;  %p583_p8 = scmp.lt.u32.totalorder %s575_s5, %s803_s30 }
  0xcb   : > { %p577_p10 = pnand %p576_p4, %p864_p9 }
  0xcc   : > { %p582_p5 = por %p581_p2, %p580_p1 }
  0xcd   : > { %p578_p12 = pneg %p577_p10 }
  0xce   : > { %p584_p11 = por %p583_p8, %p582_p5 }
  0xd0   : > { %p585_p0 = pnand %p584_p11, %p578_p12 }
  0xd2   : > { %588 = shalt.err (!%p585_p0)
}
  0xd3   : > { %468 = dma.vmem_to_hbm [thread:$0]  (%p864_p9), %s805_s23, 32, %s803_s30, %s317_s4  }
  0xd4 PF: > { %s345_s19 = sand.u32 1, %s623_s12   ;;  %p865_p7 = scmp.ne.s32.totalorder %s860_s27, 0 }
  0xd5   : > { %p866_p13 = scmp.ge.s32.totalorder %s643_s17, 2  ;;  %s346_s21 = scalar_lea.sflag [#allocation4], %s345_s19 }
  0xd7   : > { %p475_p3 = pnand %p866_p13, %p865_p7 }
  0xd9   : > { %618 = dma.done.wait (!%p475_p3), %s346_s21, 32  }
  0xda   : > { %620 = vsyncadd (!%p475_p3), %s346_s21, 4294967264  ;;  %s19_s17 = sadd.s32 1, %s643_s17   ;;  %s867_s12 = smov %s627_s13 }
  0xdb   : > { %p16_p6 = scmp.ge.s32.totalorder %s19_s17, 4   ;;  %s868_s13 = smov %s631_s14 }
  0xdc   : > { %s869_s14 = smov %s726_s26  ;;  %s870_s15 = smov %s639_s16 }
  0xdd   : > { %s871_s16 = smov %s873_s20  ;;  %18 = sbr.rel (!%p16_p6) target bundleno = 6 (0x6), region = 83 }
  0xe4   :  { %351 = vsyncpa [#allocation3], 1 }
  0xe5   :  { %353 = vsyncpa [#allocation3 + $0x1], 1 }
  0xe6   :  { %354 = vsyncpa [#allocation4], 1 }
  0xe7   :  { %356 = vsyncpa [#allocation4 + $0x1], 1 }

// kernel: tpu_custom_call.1
= control target key start
LH: loop header
LB: loop body
LE: loop exit
PB: predicated region body
PF: predicated region fallthrough
CT: control target
= control target key end

     0   :  { %8 = vsyncpa [#allocation3], 0  ;;  %s852_s0 = inlined_call_operand.hbm [shape: f32[2,1,256], index: 0, kind: input, shape index: {}]   ;;  %s853_s1 = inlined_call_operand.vmem [shape: f32[1,256], index: 1, kind: input, shape index: {}]   ;;  %s854_s2 = inlined_call_operand.vmem [shape: f32[1,256], index: 2, kind: input, shape index: {}]   ;;  %s855_s3 = inlined_call_operand.hbm [shape: f32[2,1,256], index: 3, kind: output, shape index: {}]  }
   0x1   :  { %10 = vsyncpa [#allocation3 + $0x1], 0 }
   0x2   :  { %11 = vsyncpa [#allocation4], 0 }
   0x3   :  { %13 = vsyncpa [#allocation4 + $0x1], 0  ;;  %s670_s12 = smov 0   ;;  %s672_s13 = smov 0  }
   0x4   :  { %s674_s14 = smov 0   ;;  %s676_s15 = smov 0  }
   0x5   :  { %s678_s16 = smov 0   ;;  %s680_s17 = smov 0  }
   0x6 LB: > { %s447_s18 = sadd.s32 4294967295, %s643_s17   ;;  %s448_s19 = sadd.s32 4294967294, %s643_s17   ;;  %s643_s17 = sphi %s680_s17, %s19_s17   ;;  %s639_s16 = sphi %s678_s16, %s871_s16   ;;  %s635_s15 = sphi %s676_s15, %s870_s15   ;;  %s631_s14 = sphi %s674_s14, %s869_s14   ;;  %s627_s13 = sphi %s672_s13, %s868_s13   ;;  %s623_s12 = sphi %s670_s12, %s867_s12  }
   0x7   : > { %s28_s20 = sadd.s32 1, %s639_s16  ;;  %s40_s21 = sadd.s32 1, %s631_s14 }
   0x8   : > { %p29_p0 = scmp.ge.s32.totalorder %s28_s20, 2  ;;  %p47_p1 = scmp.ne.s32.totalorder %s631_s14, %s627_s13 }
   0x9   : > { %p48_p2 = scmp.eq.s32.totalorder %s643_s17, 0  ;;  %p53_p3 = scmp.ne.s32.totalorder %s627_s13, %s623_s12 }
   0xa   : > { %s873_s20 = smov (%p29_p0, %s28_s20), 0  ;;  %p54_p5 = scmp.eq.s32.totalorder %s447_s18, 0 }
   0xb   : > { %p711_p4 = por %p48_p2, %p47_p1  ;;  %s35_s23 = ssub.s32 %s639_s16, %s873_s20 }
   0xc   : > { %p131_p6 = scmp.eq.s32.totalorder %s447_s18, 1  ;;  %p38_p7 = scmp.eq.s32.totalorder %s35_s23, 0 }
   0xd   : > { %p717_p8 = por %p54_p5, %p53_p3  ;;  %p137_p10 = scmp.eq.s32.totalorder %s448_s19, 1 }
   0xe   : > { %p721_p9 = por %p131_p6, %p47_p1  ;;  %p478_p13 = scmp.lt.s32.totalorder %s643_s17, 2 }
   0xf   : > { %s726_s26 = scalar_select %p38_p7, %s631_s14, %s40_s21  }
  0x10   : > { %s859_s25 = scalar_select %p721_p9, 1, 0 }
  0x11   : > { %p728_p11 = por %p137_p10, %p53_p3  ;;  %s171_s28 = sand.u32 1, %s631_s14  }
  0x12   : > { %s453_s29 = sshll.u32 %s171_s28, 1  ;;  %s464_s30 = sshll.u32 %s639_s16, 5 }
  0x13   : > { %s860_s27 = scalar_select %p728_p11, 1, 0 }
  0x14   : > { %s739_s6 = scalar_lea.hbm %s852_s0, %s464_s30  ;;  %s175_s7 = scalar_lea.vmem [#allocation2], %s453_s29 }
  0x15   : > { %s185_s8 = sshll.u32 %s175_s7, 4  ;;  %p745_p0 = pnand %p478_p13, %p711_p4  ;;  %s741_s8 = int_to_ptr.vmem [resolvable:$true] %s185_s8 }
  0x16   : > { %s172_s10 = scalar_lea.sflag [#allocation3], %s171_s28  ;;  %s531_s11 = scalar_lea.hbm %s739_s6, 32 }
  0x17   : > { %p532_p3 = scmp.ne.s32.totalorder %s739_s6, %s531_s11  ;;  %p533_p5 = pneg %p745_p0 }
  0x18   : > { %s536_s21 = scalar_lea.hbm %s852_s0, 64  ;;  %p537_p4 = scmp.lt.u32.totalorder %s739_s6, %s852_s0 }
  0x19   : > { %p534_p6 = pnand %p533_p5, %p532_p3  ;;  %p538_p10 = scmp.lt.u32.totalorder %s536_s21, %s531_s11 }
  0x1a   : > { %p540_p12 = scmp.lt.u32.totalorder %s531_s11, %s739_s6 }
  0x1b   : > { %p535_p7 = pneg %p534_p6  ;;  %p539_p13 = por %p538_p10, %p537_p4 }
  0x1d   : > { %p541_p1 = por %p540_p12, %p539_p13 }
  0x1f   : > { %p542_p2 = pnand %p541_p1, %p535_p7 }
  0x21   : > { %545 = shalt.err (!%p542_p2)
}
  0x22   : > { %s546_s28 = scalar_lea.vmem %s741_s8, 32  ;;  %s645_s29 = smov [#allocation2]  }
  0x23   : > { %p547_p3 = scmp.ne.s32.totalorder %s741_s8, %s546_s28  ;;  %s551_s30 = sshll.u32 %s645_s29, 4  ;;  %s552_s30 = int_to_ptr.vmem [resolvable:$false] %s551_s30 }
  0x24   : > { %s553_s4 = scalar_lea.vmem %s552_s30, 64  ;;  %p554_p9 = scmp.lt.s32.totalorder %s741_s8, %s552_s30 }
  0x25   : > { %p549_p6 = pnand %p547_p3, %p533_p5  ;;  %p555_p4 = scmp.lt.s32.totalorder %s553_s4, %s546_s28 }
  0x27   : > { %p550_p11 = pneg %p549_p6  ;;  %p556_p10 = por %p555_p4, %p554_p9 }
  0x29   : > { %p557_p12 = pnand %p556_p10, %p550_p11 }
  0x2b   : > { %560 = shalt.err (!%p557_p12)
}
  0x2c   : > { %473 = dma.hbm_to_vmem [thread:$0]  (!%p745_p0), %s739_s6, 32, %s741_s8, %s172_s10  }
  0x2d   : > { %p862_p1 = scmp.lt.s32.totalorder %s643_s17, 3  ;;  %p863_p2 = scmp.ge.s32.totalorder %s643_s17, 1 }
  0x2f   : > { %p191_p5 = pnand %p863_p2, %p862_p1 }
  0x30   : > { %s781_s5 = sand.u32 (!%p191_p5), 1, %s627_s13  }
  0x31   : > { %194 = sbr.rel (%p191_p5) target bundleno = 212 (0xd4), region = 32  ;;  %s457_s7 = sshll.u32 (!%p191_p5), %s781_s5, 1 }
  0x32   : > { %s197_s11 = scalar_lea.sflag (!%p191_p5), [#allocation3], %s781_s5  ;;  %s200_s9 = scalar_lea.vmem (!%p191_p5), [#allocation2], %s457_s7 }
  0x38   : > { %614 = dma.done.wait (%p717_p8), %s197_s11, 32  }
  0x39   : > { %616 = vsyncadd (%p717_p8), %s197_s11, 4294967264  ;;  %v241_v0 = vlaneseq  ;;  %v239_v4 = vld [vmem:[%s200_s9] sm:$0x3]  ;;  %s646_s6 = smov 1   ;;  %s647_s8 = smov 127  }
  0x3a   : > { %v648_v9 = vmov 1966171168   ;;  %v278_v13 = vld [vmem:[%s854_s2] sm:$0x3]  ;;  %s465_s21 = sshll.u32 %s635_s15, 5  ;;  %s230_s22 = scalar_lea.vmem [#allocation5], %s457_s7 }
  0x3b   : > { %v242_v1 = vshrl.u32 %v241_v0, 7  ;;  %v256_v7 = vand.u32 127, %v241_v0  ;;  %v296_v10 = vunpack.c.l.s4 %v648_v9  ;;  %v276_v32 = vld [vmem:[%s853_s1] sm:$0x3]  ;;  %s333_s23 = sshll.u32 %s230_s22, 4  ;;  %vm313_vm4 = vcmp.lt.s32.totalorder %v241_v0, 256  ;;  %s803_s30 = scalar_lea.hbm %s855_s3, %s465_s21  ;;  %s805_s23 = int_to_ptr.vmem [resolvable:$true] %s333_s23 }
  0x3c   : > { %v277_v34 = vmul.f32 %v276_v32, %v239_v4  ;;  %s317_s4 = scalar_lea.sflag [#allocation4], %s781_s5  ;;  %s561_s11 = scalar_lea.vmem %s805_s23, 32 }
  0x3d   : > { %v243_v2 = vsub.s32 0, %v242_v1  ;;  %v247_v3 = vsub.s32 1, %v242_v1  ;;  %v267_v8 = vadd.s32 128, %v256_v7  ;;  %v268_v14 = vand.u32 1, %v256_v7  ;;  %p562_p8 = scmp.ne.s32.totalorder %s805_s23, %s561_s11  ;;  %p864_p9 = scmp.ne.s32.totalorder %s859_s25, 0 }
  0x3e   : > { %vm257_vm0 = vcmp.lt.s32.totalorder %v256_v7, 127  ;;  %v297_v17 = vunpack.c.0.s8 %v296_v10  ;;  %vm264_vm1 = vcmp.lt.s32.totalorder %v256_v7, 1  ;;  %s649_s15 = smov [#allocation5]  }
  0x3f   : > { %v244_v5 = vrot.slane %v239_v4, %v243_v2  ;;  %v248_v6 = vrot.slane %v239_v4, %v247_v3  ;;  %v269_v15 = vand.u32 1, %v267_v8  ;;  %v283_v16 = vrot.slane %v278_v13, %v243_v2  ;;  %p563_p11 = pnand %p562_p8, %p864_p9  ;;  %s565_s7 = sshll.u32 %s649_s15, 4  ;;  %s566_s7 = int_to_ptr.vmem [resolvable:$false] %s565_s7 }
  0x40   : > { %v287_v18 = vrot.slane %v278_v13, %v247_v3  ;;  %vm270_vm2 = vcmp.eq.s32.totalorder %v268_v14, 0  ;;  %v300_v29 = vsub.s32 %v297_v17, %v242_v1  ;;  %s567_s9 = scalar_lea.vmem %s566_s7, 64  ;;  %p568_p7 = scmp.lt.s32.totalorder %s805_s23, %s566_s7 }
  0x41   : > { %260 = vrot.lane.b32.xlu1 %v244_v5, %s646_s6  ;;  %251 = vrot.lane.b32.xlu0 %v244_v5, %s647_s8  ;;  %vm271_vm3 = vcmp.eq.s32.totalorder %v269_v15, 0  ;;  %p564_p0 = pneg %p563_p11  ;;  %p569_p13 = scmp.lt.s32.totalorder %s567_s9, %s561_s11 }
  0x43   : > { %p570_p3 = por %p569_p13, %p568_p7 }
  0x45   : > { %262 = vrot.lane.b32.xlu1 %v248_v6, %s646_s6  ;;  %253 = vrot.lane.b32.xlu0 %v248_v6, %s647_s8  ;;  %p571_p6 = pnand %p570_p3, %p564_p0 }
  0xb3   : > { %v261_v11 = vpop.permute.xlu1 %260  ;;  %v252_v12 = vpop.permute.xlu0 %251 }
  0xb7   : > { %v263_v19 = vpop.permute.xlu1 %262  ;;  %v254_v20 = vpop.permute.xlu0 %253 }
  0xb8   : > { %v258_v21 = vsel %vm257_vm0, %v252_v12, %v254_v20  ;;  %v259_v22 = vsel %vm257_vm0, %v254_v20, %v252_v12  ;;  %v265_v25 = vsel %vm264_vm1, %v261_v11, %v263_v19  ;;  %v266_v26 = vsel %vm264_vm1, %v263_v19, %v261_v11 }
  0xb9   : > { %v272_v23 = vsub.f32 0.0, %v258_v21  ;;  %v273_v24 = vsub.f32 0.0, %v259_v22 }
  0xbb   : > { %v274_v27 = vsel %vm270_vm2, %v272_v23, %v266_v26  ;;  %v275_v28 = vsel %vm271_vm3, %v273_v24, %v265_v25 }
  0xbc   : > { %v290_v30 = vmul.f32 %v283_v16, %v274_v27  ;;  %v291_v31 = vmul.f32 %v287_v18, %v275_v28 }
  0xbe   : > { %v294_v33 = vcombine.low %v290_v30, %v291_v31 }
  0xc0   : > { %v301_v35 = vrot.slane %v294_v33, %v300_v29 }
  0xc2   : > { %v308_v36 = vrot.slane %v301_v35, %v300_v29 }
  0xc4   : > { %v310_v37 = vadd.f32 %v308_v36, %v277_v34 }
  0xc6   : > { %315 = vst.msk [vmem:[%s230_s22] sm:$0x3] %vm313_vm4, %v310_v37 }
  0xc7   : > { %574 = shalt.err (!%p571_p6)
}
  0xc8   : > { %s575_s5 = scalar_lea.hbm %s803_s30, 32  ;;  %s579_s24 = scalar_lea.hbm %s855_s3, 64 }
  0xc9   : > { %p576_p4 = scmp.ne.s32.totalorder %s803_s30, %s575_s5  ;;  %p580_p1 = scmp.lt.u32.totalorder %s803_s30, %s855_s3 }
  0xca   : > { %p581_p2 = scmp.lt.u32.totalorder %s579_s24, %s575_s5  ;;  %p583_p8 = scmp.lt.u32.totalorder %s575_s5, %s803_s30 }
  0xcb   : > { %p577_p10 = pnand %p576_p4, %p864_p9 }
  0xcc   : > { %p582_p5 = por %p581_p2, %p580_p1 }
  0xcd   : > { %p578_p12 = pneg %p577_p10 }
  0xce   : > { %p584_p11 = por %p583_p8, %p582_p5 }
  0xd0   : > { %p585_p0 = pnand %p584_p11, %p578_p12 }
  0xd2   : > { %588 = shalt.err (!%p585_p0)
}
  0xd3   : > { %468 = dma.vmem_to_hbm [thread:$0]  (%p864_p9), %s805_s23, 32, %s803_s30, %s317_s4  }
  0xd4 PF: > { %s345_s19 = sand.u32 1, %s623_s12   ;;  %p865_p7 = scmp.ne.s32.totalorder %s860_s27, 0 }
  0xd5   : > { %p866_p13 = scmp.ge.s32.totalorder %s643_s17, 2  ;;  %s346_s21 = scalar_lea.sflag [#allocation4], %s345_s19 }
  0xd7   : > { %p475_p3 = pnand %p866_p13, %p865_p7 }
  0xd9   : > { %618 = dma.done.wait (!%p475_p3), %s346_s21, 32  }
  0xda   : > { %620 = vsyncadd (!%p475_p3), %s346_s21, 4294967264  ;;  %s19_s17 = sadd.s32 1, %s643_s17   ;;  %s867_s12 = smov %s627_s13 }
  0xdb   : > { %p16_p6 = scmp.ge.s32.totalorder %s19_s17, 4   ;;  %s868_s13 = smov %s631_s14 }
  0xdc   : > { %s869_s14 = smov %s726_s26  ;;  %s870_s15 = smov %s639_s16 }
  0xdd   : > { %s871_s16 = smov %s873_s20  ;;  %18 = sbr.rel (!%p16_p6) target bundleno = 6 (0x6), region = 83 }
  0xe4   :  { %351 = vsyncpa [#allocation3], 1 }
  0xe5   :  { %353 = vsyncpa [#allocation3 + $0x1], 1 }
  0xe6   :  { %354 = vsyncpa [#allocation4], 1 }
  0xe7   :  { %356 = vsyncpa [#allocation4 + $0x1], 1 }

</bundles_post_ra>
